<compile_context>
chip_gen: v7x
topology: tpu7x:2x2x1
jax: 0.10.0
libtpu: 0.0.40
codegen_flags: <defaults>
</compile_context>

<pallas_src>
import math

import jax
import jax.numpy as jnp
from jax.experimental import pallas as pl
from jax.experimental.pallas import tpu as pltpu


def _tv_partial_kernel(hmask_ref, x_ref, out_ref):
    slab = x_ref[...].astype(jnp.float32)                 # (R, W) block, R = planes*H
    rows, w = slab.shape

    # H-direction: |x[r, :] - x[r-1, :]| via a sublane roll; plane-boundary rows
    # (including the wrap at r == 0) are zeroed by the precomputed mask input.
    d_h = jnp.abs(slab - pltpu.roll(slab, shift=1, axis=0)) * hmask_ref[...]

    # W-direction: |x[:, c] - x[:, c-1]| via a lane roll; mask the wrapped column 0.
    col = jax.lax.broadcasted_iota(jnp.int32, (rows, w), 1)
    d_w = jnp.where(col > 0, jnp.abs(slab - pltpu.roll(slab, shift=1, axis=1)), 0.0)

    # Reduce only the leading vreg-group axis (plain VPU adds) -> (8, W) partials.
    # The cross-lane/sublane reduction is paid once, outside the kernel.
    groups = rows // 8
    out_ref[0, 0] = d_h.reshape(groups, 8, w).sum(axis=0)
    out_ref[0, 1] = d_w.reshape(groups, 8, w).sum(axis=0)


def tv_loss(x, *, block_bytes=2 * 1024 * 1024):
    """Total-variation loss, identical semantics to the PyTorch TV_loss.forward.

    x: (B, C, H, W) array. Returns a scalar:
        (sum|dX/dh| / (C*(H-1)*W) + sum|dX/dw| / (C*H*(W-1))) / B
    Note: H == 1 or W == 1 gives a zero count -> inf/nan, same as the PyTorch module.
    """
    B, C, H, W = x.shape
    count_h = C * (H - 1) * W
    count_w = C * H * (W - 1)

    n_planes = B * C
    itemsize = jnp.dtype(x.dtype).itemsize
    sublane = max(8, 32 // itemsize)                # 8 (f32), 16 (bf16), 32 (int8)

    # Planes-per-block granularity so block rows are sublane-aligned, sized so the
    # lane-padded VMEM block is ~block_bytes (double-buffered -> fits all gens).
    k = sublane // math.gcd(H, sublane)
    lane_padded_row_bytes = (-(-W // 128)) * 128 * 4
    target_rows = max(sublane, block_bytes // lane_padded_row_bytes)
    planes_per_block = max(k, (min(n_planes, max(1, target_rows // H)) // k) * k)

    # Pad with whole zero planes so every block holds the same number of planes.
    pad_planes = (-n_planes) % planes_per_block
    x_rows = x.reshape(n_planes * H, W)
    if pad_planes:
        x_rows = jnp.concatenate(
            [x_rows, jnp.zeros((pad_planes * H, W), dtype=x.dtype)], axis=0)

    n_chunks = (n_planes + pad_planes) // planes_per_block
    block_rows = planes_per_block * H

    # Plane-boundary mask, shared by every block: 0 at the first row of each plane.
    hmask = jnp.where(jnp.arange(block_rows) % H == 0, 0.0, 1.0).astype(
        jnp.float32).reshape(block_rows, 1)

    partials = pl.pallas_call(
        _tv_partial_kernel,
        out_shape=jax.ShapeDtypeStruct((n_chunks, 2, 8, W), jnp.float32),
        grid=(n_chunks,),
        in_specs=[
            pl.BlockSpec((block_rows, 1), lambda i: (0, 0)),   # mask: fetched once
            pl.BlockSpec((block_rows, W), lambda i: (i, 0)),   # one plane-chunk/step
        ],
        out_specs=pl.BlockSpec((1, 2, 8, W), lambda i: (i, 0, 0, 0)),
        compiler_params=pltpu.CompilerParams(
            dimension_semantics=("parallel",),   # independent chunks -> 2 TCs on v7x
        ),
    )(hmask, x_rows)

    h_tv = jnp.sum(partials[:, 0])
    w_tv = jnp.sum(partials[:, 1])
    return (h_tv / count_h + w_tv / count_w) / B


def tv_loss_ref(x):
    """Pure-JAX reference matching the PyTorch module exactly."""
    B, C, H, W = x.shape
    count_h = C * (H - 1) * W
    count_w = C * H * (W - 1)
    h_tv = jnp.sum(jnp.abs(x[:, :, 1:, :] - x[:, :, :-1, :]))
    w_tv = jnp.sum(jnp.abs(x[:, :, :, 1:] - x[:, :, :, :-1]))
    return (h_tv / count_h + w_tv / count_w) / B


if __name__ == "__main__":
    key = jax.random.PRNGKey(0)
    # Small NCHW input consistent with the module's forward.
    x = jax.random.normal(key, (2, 4, 16, 16), dtype=jnp.float32)

    result = jax.block_until_ready(tv_loss(x))
    expected = jax.block_until_ready(tv_loss_ref(x))

    assert jnp.allclose(result, expected, rtol=1e-5, atol=1e-6), (result, expected)
    print("KERNEL_OK")
</pallas_src>

<mosaic_0001>
module attributes {stable_mosaic.version = 11 : i64} {
  func.func @_tv_partial_kernel(%arg0: i32, %arg1: memref<128x1xf32, #tpu.memory_space<vmem>>, %arg2: memref<128x16xf32, #tpu.memory_space<vmem>>, %arg3: memref<1x2x8x16xf32, #tpu.memory_space<vmem>>) attributes {dimension_semantics = [#tpu.dimension_semantics<parallel>], iteration_bounds = array<i64: 1>, scalar_prefetch = 0 : i64, scratch_operands = 0 : i64, tpu.core_type = #tpu.core_type<tc>, window_params = [{pipeline_mode = #tpu.pipeline_mode<synchronous>, transform_indices = @transform_0, window_bounds = array<i64: 128, 1>}, {transform_indices = @transform_1, window_bounds = array<i64: 128, 16>}, {transform_indices = @transform_2, window_bounds = array<i64: 1, 2, 8, 16>}]} {
    %c0 = arith.constant 0 : index
    %c0_0 = arith.constant 0 : index
    %0 = vector.load %arg2[%c0, %c0_0] : memref<128x16xf32, #tpu.memory_space<vmem>>, vector<128x16xf32>
    %c1_i32 = arith.constant 1 : i32
    %1 = tpu.dynamic_rotate %0 by %c1_i32 dim 0 : vector<128x16xf32>, i32 -> vector<128x16xf32>
    %2 = arith.subf %0, %1 : vector<128x16xf32>
    %3 = math.absf %2 : vector<128x16xf32>
    %c0_1 = arith.constant 0 : index
    %c0_2 = arith.constant 0 : index
    %4 = vector.load %arg1[%c0_1, %c0_2] : memref<128x1xf32, #tpu.memory_space<vmem>>, vector<128x1xf32>
    %5 = vector.broadcast %4 : vector<128x1xf32> to vector<128x16xf32>
    %6 = arith.mulf %3, %5 : vector<128x16xf32>
    %7 = tpu.iota {dimensions = array<i32: 1>} : vector<128x16xi32>
    %c0_i32 = arith.constant 0 : i32
    %8 = vector.broadcast %c0_i32 : i32 to vector<128x16xi32>
    %9 = arith.cmpi sgt, %7, %8 : vector<128x16xi32>
    %c1_i32_3 = arith.constant 1 : i32
    %10 = tpu.dynamic_rotate %0 by %c1_i32_3 dim 1 : vector<128x16xf32>, i32 -> vector<128x16xf32>
    %11 = arith.subf %0, %10 : vector<128x16xf32>
    %12 = math.absf %11 : vector<128x16xf32>
    %cst = arith.constant 0.000000e+00 : f32
    %13 = vector.broadcast %cst : f32 to vector<128x16xf32>
    %14 = arith.select %9, %12, %13 : vector<128x16xi1>, vector<128x16xf32>
    %15 = vector.shape_cast %6 : vector<128x16xf32> to vector<16x8x16xf32>
    %cst_4 = arith.constant dense<0.000000e+00> : vector<8x16xf32>
    %16 = vector.multi_reduction <add>, %15, %cst_4 [0] : vector<16x8x16xf32> to vector<8x16xf32>
    %c0_5 = arith.constant 0 : index
    %c0_6 = arith.constant 0 : index
    %c0_7 = arith.constant 0 : index
    %c0_8 = arith.constant 0 : index
    %17 = vector.load %arg3[%c0_5, %c0_6, %c0_7, %c0_8] : memref<1x2x8x16xf32, #tpu.memory_space<vmem>>, vector<1x1x8x16xf32>
    %18 = vector.shape_cast %17 : vector<1x1x8x16xf32> to vector<8x16xf32>
    %19 = vector.shape_cast %16 : vector<8x16xf32> to vector<1x1x8x16xf32>
    tpu.vector_store %arg3[%c0_5, %c0_6, %c0_7, %c0_8], %19 {strides = array<i32>} : memref<1x2x8x16xf32, #tpu.memory_space<vmem>>, vector<1x1x8x16xf32>,
    %20 = vector.shape_cast %14 : vector<128x16xf32> to vector<16x8x16xf32>
    %cst_9 = arith.constant dense<0.000000e+00> : vector<8x16xf32>
    %21 = vector.multi_reduction <add>, %20, %cst_9 [0] : vector<16x8x16xf32> to vector<8x16xf32>
    %c0_10 = arith.constant 0 : index
    %c1 = arith.constant 1 : index
    %c0_11 = arith.constant 0 : index
    %c0_12 = arith.constant 0 : index
    %22 = vector.load %arg3[%c0_10, %c1, %c0_11, %c0_12] : memref<1x2x8x16xf32, #tpu.memory_space<vmem>>, vector<1x1x8x16xf32>
    %23 = vector.shape_cast %22 : vector<1x1x8x16xf32> to vector<8x16xf32>
    %24 = vector.shape_cast %21 : vector<8x16xf32> to vector<1x1x8x16xf32>
    tpu.vector_store %arg3[%c0_10, %c1, %c0_11, %c0_12], %24 {strides = array<i32>} : memref<1x2x8x16xf32, #tpu.memory_space<vmem>>, vector<1x1x8x16xf32>,
    return
  }
  func.func @transform_0(%arg0: i32) -> (i32, i32) {
    %c0_i32 = arith.constant 0 : i32
    %c0_i32_0 = arith.constant 0 : i32
    %c0_i32_1 = arith.constant 0 : i32
    return %c0_i32, %c0_i32_0 : i32, i32
  }
  func.func @transform_1(%arg0: i32) -> (i32, i32) {
    %c0_i32 = arith.constant 0 : i32
    %c0_i32_0 = arith.constant 0 : i32
    return %arg0, %c0_i32 : i32, i32
  }
  func.func @transform_2(%arg0: i32) -> (i32, i32, i32, i32) {
    %c0_i32 = arith.constant 0 : i32
    %c0_i32_0 = arith.constant 0 : i32
    %c0_i32_1 = arith.constant 0 : i32
    %c0_i32_2 = arith.constant 0 : i32
    return %arg0, %c0_i32, %c0_i32_0, %c0_i32_1 : i32, i32, i32, i32
  }
}

</mosaic_0001>

<bundles_post_ra>
// kernel: tpu_custom_call.1
= control target key start
LH: loop header
LB: loop body
LE: loop exit
PB: predicated region body
PF: predicated region fallthrough
CT: control target
= control target key end

     0   :  { %s533_s13 = smov 16   ;;  %v534_v4 = vmov 0   ;;  %s989_s0 = inlined_call_operand.vmem [shape: f32[128,1], index: 0, kind: input, shape index: {}]   ;;  %s990_s1 = inlined_call_operand.vmem [shape: f32[128,16], index: 1, kind: input, shape index: {}]   ;;  %s991_s2 = inlined_call_operand.hbm [shape: f32[1,2,8,16], index: 2, kind: output, shape index: {}]  }
   0x1   :  { %v557_v0 = vld [vmem:[%s990_s1] sm:$0xff]  ;;  %v562_v1 = vld [vmem:[%s990_s1 + $0x10] sm:$0xff]  ;;  %v571_v2 = vld [vmem:[%s990_s1 + $0x8] sm:$0xff]  ;;  %507 = vset.pattern.permute.xlu0 %v534_v4  ;;  %508 = vset.pattern.permute.xlu1 %v534_v4 }
   0x2   :  { %211 = vrot.lane.b32.xlu0 %v557_v0, %s533_s13  ;;  %217 = vrot.lane.b32.xlu1 %v562_v1, %s533_s13  ;;  %v576_v3 = vld [vmem:[%s990_s1 + $0x18] sm:$0xff]  ;;  %v585_v5 = vld [vmem:[%s990_s1 + $0x20] sm:$0xff] }
   0x3   :  { %v590_v6 = vld [vmem:[%s990_s1 + $0x28] sm:$0xff] }
   0x6   :  { %214 = vrot.lane.b32.xlu0 %v571_v2, %s533_s13  ;;  %220 = vrot.lane.b32.xlu1 %v576_v3, %s533_s13 }
   0x7   :  { %7 = vsyncpa [#allocation3], 0  ;;  %v599_v7 = vld [vmem:[%s990_s1 + $0x30] sm:$0xff]  ;;  %v604_v8 = vld [vmem:[%s990_s1 + $0x38] sm:$0xff]  ;;  %vm210_vm0 = vcmask 1047680   ;;  %s535_s5 = smov 113  }
   0x8   :  { %v613_v9 = vld [vmem:[%s990_s1 + $0x40] sm:$0xff]  ;;  %v618_v10 = vld [vmem:[%s990_s1 + $0x48] sm:$0xff]  ;;  %v627_v11 = vld [vmem:[%s990_s1 + $0x50] sm:$0xff]  ;;  %vm419_vm2 = vcmask 130048  }
   0x9   :  { %v632_v12 = vld [vmem:[%s990_s1 + $0x58] sm:$0xff]  ;;  %v641_v13 = vld [vmem:[%s990_s1 + $0x60] sm:$0xff]  ;;  %v646_v14 = vld [vmem:[%s990_s1 + $0x68] sm:$0xff] }
   0xa   :  { %223 = vrot.lane.b32.xlu0 %v585_v5, %s533_s13  ;;  %226 = vrot.lane.b32.xlu1 %v590_v6, %s533_s13  ;;  %v655_v15 = vld [vmem:[%s990_s1 + $0x70] sm:$0xff]  ;;  %v660_v16 = vld [vmem:[%s990_s1 + $0x78] sm:$0xff] }
   0xb   :  { %v95_v17 = vld [vmem:[%s989_s0] sm:$0xff]  ;;  %v96_v18 = vld [vmem:[%s989_s0 + $0x8] sm:$0xff]  ;;  %v98_v51 = vld [vmem:[%s989_s0 + $0x18] sm:$0xff] }
   0xc   :  { %v97_v52 = vld [vmem:[%s989_s0 + $0x10] sm:$0xff]  ;;  %v99_v53 = vld [vmem:[%s989_s0 + $0x20] sm:$0xff]  ;;  %v100_v54 = vld [vmem:[%s989_s0 + $0x28] sm:$0xff] }
   0xd   :  { %v101_v55 = vld [vmem:[%s989_s0 + $0x30] sm:$0xff]  ;;  %v102_v56 = vld [vmem:[%s989_s0 + $0x38] sm:$0xff]  ;;  %v103_v57 = vld [vmem:[%s989_s0 + $0x40] sm:$0xff] }
   0xe   :  { %229 = vrot.lane.b32.xlu0 %v599_v7, %s533_s13  ;;  %232 = vrot.lane.b32.xlu1 %v604_v8, %s533_s13  ;;  %v104_v58 = vld [vmem:[%s989_s0 + $0x48] sm:$0xff]  ;;  %v105_v63 = vld [vmem:[%s989_s0 + $0x50] sm:$0xff] }
  0x12   :  { %235 = vrot.lane.b32.xlu0 %v613_v9, %s533_s13  ;;  %238 = vrot.lane.b32.xlu1 %v618_v10, %s533_s13 }
  0x16   :  { %241 = vrot.lane.b32.xlu0 %v627_v11, %s533_s13  ;;  %244 = vrot.lane.b32.xlu1 %v632_v12, %s533_s13 }
  0x1a   :  { %247 = vrot.lane.b32.xlu0 %v641_v13, %s533_s13  ;;  %250 = vrot.lane.b32.xlu1 %v646_v14, %s533_s13 }
  0x1e   :  { %253 = vrot.lane.b32.xlu0 %v655_v15, %s533_s13  ;;  %256 = vrot.lane.b32.xlu1 %v660_v16, %s533_s13 }
  0x22   :  { %113 = vperm.xlu0 %507, %v95_v17   ;;  %118 = vperm.xlu1 %508, %v96_v18  }
  0x74   :  { %v212_v19 = vpop.permute.xlu0 %211  ;;  %v218_v20 = vpop.permute.xlu1 %217 }
  0x75   :  { %v213_v21 = vsel %vm210_vm0, %v212_v19, %v557_v0  ;;  %v219_v22 = vsel %vm210_vm0, %v218_v20, %v562_v1  ;;  %v106_v19 = vld [vmem:[%s989_s0 + $0x58] sm:$0xff] }
  0x76   :  { %259 = vrot.lane.b32.xlu0 %v213_v21, %s533_s13 }
  0x78   :  { %v215_v23 = vpop.permute.xlu0 %214  ;;  %v221_v24 = vpop.permute.xlu1 %220 }
  0x79   :  { %v216_v25 = vsel %vm210_vm0, %v215_v23, %v571_v2  ;;  %v222_v26 = vsel %vm210_vm0, %v221_v24, %v576_v3  ;;  %v107_v23 = vld [vmem:[%s989_s0 + $0x60] sm:$0xff] }
  0x7a   :  { %263 = vrot.lane.b32.xlu0 %v219_v22, %s533_s13  ;;  %261 = vrot.lane.b32.xlu1 %v216_v25, %s533_s13 }
  0x7c   :  { %v224_v27 = vpop.permute.xlu0 %223  ;;  %v227_v28 = vpop.permute.xlu1 %226 }
  0x7d   :  { %v225_v29 = vsel %vm210_vm0, %v224_v27, %v585_v5  ;;  %v228_v30 = vsel %vm210_vm0, %v227_v28, %v590_v6 }
  0x7e   :  { %265 = vrot.lane.b32.xlu1 %v222_v26, %s533_s13  ;;  %267 = vrot.lane.b32.xlu0 %v225_v29, %s533_s13  ;;  %v108_v26 = vld [vmem:[%s989_s0 + $0x68] sm:$0xff] }
  0x80   :  { %v230_v31 = vpop.permute.xlu0 %229  ;;  %v233_v32 = vpop.permute.xlu1 %232 }
  0x81   :  { %v231_v33 = vsel %vm210_vm0, %v230_v31, %v599_v7  ;;  %v234_v34 = vsel %vm210_vm0, %v233_v32, %v604_v8 }
  0x82   :  { %269 = vrot.lane.b32.xlu1 %v228_v30, %s533_s13  ;;  %271 = vrot.lane.b32.xlu0 %v231_v33, %s533_s13  ;;  %v109_v30 = vld [vmem:[%s989_s0 + $0x70] sm:$0xff]  ;;  %v110_v33 = vld [vmem:[%s989_s0 + $0x78] sm:$0xff]  ;;  %s536_s0 = smov [#allocation2]  }
  0x83   :  { %s490_s1 = sshll.u32 %s536_s0, 4  ;;  %s491_s1 = int_to_ptr.vmem [resolvable:$true] %s490_s1 }
  0x84   :  { %v236_v35 = vpop.permute.xlu0 %235  ;;  %v239_v36 = vpop.permute.xlu1 %238  ;;  %s509_s19 = scalar_lea.vmem %s491_s1, 256  ;;  %p514_p1 = scmp.lt.s32.totalorder %s491_s1, %s491_s1 }
  0x85   :  { %v237_v37 = vsel %vm210_vm0, %v236_v35, %v613_v9  ;;  %v240_v38 = vsel %vm210_vm0, %v239_v36, %v618_v10  ;;  %p510_p0 = scmp.ne.s32.totalorder %s491_s1, %s509_s19  ;;  %p515_p2 = scmp.lt.s32.totalorder %s509_s19, %s509_s19 }
  0x86   :  { %273 = vrot.lane.b32.xlu1 %v234_v34, %s533_s13  ;;  %275 = vrot.lane.b32.xlu0 %v237_v37, %s533_s13 }
  0x87   :  { %p516_p3 = por %p515_p2, %p514_p1 }
  0x88   :  { %v242_v39 = vpop.permute.xlu0 %241  ;;  %v245_v40 = vpop.permute.xlu1 %244 }
  0x89   :  { %v243_v41 = vsel %vm210_vm0, %v242_v39, %v627_v11  ;;  %v246_v42 = vsel %vm210_vm0, %v245_v40, %v632_v12  ;;  %p517_p4 = pnand %p516_p3, %p510_p0 }
  0x8a   :  { %277 = vrot.lane.b32.xlu1 %v240_v38, %s533_s13  ;;  %279 = vrot.lane.b32.xlu0 %v243_v41, %s533_s13 }
  0x8c   :  { %v248_v43 = vpop.permute.xlu0 %247  ;;  %v251_v44 = vpop.permute.xlu1 %250 }
  0x8d   :  { %v249_v45 = vsel %vm210_vm0, %v248_v43, %v641_v13  ;;  %v252_v46 = vsel %vm210_vm0, %v251_v44, %v646_v14 }
  0x8e   :  { %281 = vrot.lane.b32.xlu1 %v246_v42, %s533_s13  ;;  %283 = vrot.lane.b32.xlu0 %v249_v45, %s533_s13 }
  0x90   :  { %v254_v47 = vpop.permute.xlu0 %253  ;;  %v257_v48 = vpop.permute.xlu1 %256 }
  0x91   :  { %v255_v49 = vsel %vm210_vm0, %v254_v47, %v655_v15  ;;  %v258_v50 = vsel %vm210_vm0, %v257_v48, %v660_v16 }
  0x92   :  { %285 = vrot.lane.b32.xlu1 %v252_v46, %s533_s13  ;;  %287 = vrot.lane.b32.xlu0 %v255_v49, %s533_s13 }
  0x96   :  { %289 = vrot.lane.b32.xlu1 %v258_v50, %s533_s13  ;;  %128 = vperm.xlu0 %507, %v98_v51  }
  0x9a   :  { %123 = vperm.xlu1 %508, %v97_v52   ;;  %v44_v52 = vlaneseq }
  0x9e   :  { %133 = vperm.xlu1 %508, %v99_v53  }
  0xa1   :  { %v744_v59 = vpop.permute.xlu0 %113  ;;  %v746_v60 = vpop.permute.xlu1 %118 }
  0xa2   :  { %138 = vperm.xlu1 %508, %v100_v54   ;;  %v815_v54 = vshrl.u32 %v44_v52, 7 }
  0xa4   :  { %vm46_vm1 = vcmp.lt.s32.totalorder %v815_v54, 1 }
  0xa6   :  { %143 = vperm.xlu1 %508, %v101_v55   ;;  %v43_v55 = vrot.slane %v660_v16, 7 }
  0xaa   :  { %148 = vperm.xlu1 %508, %v102_v56   ;;  %v28_v56 = vrot.slane %v557_v0, 7 }
  0xae   :  { %153 = vperm.xlu1 %508, %v103_v57   ;;  %v29_v57 = vrot.slane %v571_v2, 7 }
  0xb2   :  { %158 = vperm.xlu1 %508, %v104_v58  }
  0xe8   :  { %v260_v61 = vpop.permute.xlu0 %259 }
  0xe9   :  { %v291_v62 = vsel %vm210_vm0, %v260_v61, %v557_v0  ;;  %v62_v61 = vsel %vm46_vm1, %v43_v55, %v28_v56 }
  0xea   :  { %323 = vrot.lane.b32.xlu1 %v291_v62, %s535_s5  ;;  %v61_v62 = vsel %vm46_vm1, %v28_v56, %v29_v57 }
  0xec   :  { %v262_v4 = vpop.permute.xlu1 %261  ;;  %v264_v17 = vpop.permute.xlu0 %263 }
  0xed   :  { %v292_v18 = vsel %vm210_vm0, %v262_v4, %v571_v2  ;;  %v293_v20 = vsel %vm210_vm0, %v264_v17, %v562_v1 }
  0xee   :  { %325 = vrot.lane.b32.xlu0 %v292_v18, %s535_s5  ;;  %163 = vperm.xlu1 %508, %v105_v63   ;;  %v30_v63 = vrot.slane %v562_v1, 7  ;;  %v63_v18 = vsub.f32 %v557_v0, %v62_v61 }
  0xf0   :  { %v266_v21 = vpop.permute.xlu1 %265  ;;  %v268_v22 = vpop.permute.xlu0 %267  ;;  %v60_v4 = vsel %vm46_vm1, %v29_v57, %v30_v63 }
  0xf1   :  { %v294_v24 = vsel %vm210_vm0, %v266_v21, %v576_v3  ;;  %v295_v27 = vsel %vm210_vm0, %v268_v22, %v585_v5  ;;  %v65_v21 = vsub.f32 %v562_v1, %v60_v4  ;;  %v32_v22 = vrot.slane %v585_v5, 7 }
  0xf2   :  { %168 = vperm.xlu1 %508, %v106_v19   ;;  %327 = vrot.lane.b32.xlu0 %v293_v20, %s535_s5  ;;  %v64_v19 = vsub.f32 %v571_v2, %v61_v62  ;;  %v31_v20 = vrot.slane %v576_v3, 7 }
  0xf4   :  { %v272_v25 = vpop.permute.xlu0 %271  ;;  %v270_v28 = vpop.permute.xlu1 %269 }
  0xf5   :  { %v296_v31 = vsel %vm210_vm0, %v270_v28, %v590_v6  ;;  %v297_v34 = vsel %vm210_vm0, %v272_v25, %v599_v7  ;;  %v59_v25 = vsel %vm46_vm1, %v30_v63, %v31_v20  ;;  %v81_v28 = vand.u32 2147483647, %v65_v21 }
  0xf6   :  { %173 = vperm.xlu1 %508, %v107_v23   ;;  %329 = vrot.lane.b32.xlu0 %v294_v24, %s535_s5  ;;  %v79_v23 = vand.u32 2147483647, %v63_v18  ;;  %v80_v24 = vand.u32 2147483647, %v64_v19  ;;  %v38_v19 = vrot.slane %v627_v11, 7 }
  0xf8   :  { %v276_v29 = vpop.permute.xlu0 %275  ;;  %v274_v35 = vpop.permute.xlu1 %273 }
  0xf9   :  { %v298_v37 = vsel %vm210_vm0, %v274_v35, %v604_v8  ;;  %v299_v40 = vsel %vm210_vm0, %v276_v29, %v613_v9  ;;  %v66_v29 = vsub.f32 %v576_v3, %v59_v25 }
  0xfa   :  { %178 = vperm.xlu1 %508, %v108_v26   ;;  %331 = vrot.lane.b32.xlu0 %v295_v27, %s535_s5  ;;  %v33_v26 = vrot.slane %v590_v6, 7 }
  0xfc   :  { %v280_v32 = vpop.permute.xlu0 %279  ;;  %v278_v41 = vpop.permute.xlu1 %277  ;;  %v57_v35 = vsel %vm46_vm1, %v32_v22, %v33_v26 }
  0xfd   :  { %v300_v42 = vsel %vm210_vm0, %v278_v41, %v618_v10  ;;  %v301_v43 = vsel %vm210_vm0, %v280_v32, %v627_v11  ;;  %v191_v32 = vmul.f32 %v744_v59, %v79_v23  ;;  %v36_v41 = vrot.slane %v613_v9, 7 }
  0xfe   :  { %183 = vperm.xlu1 %508, %v109_v30   ;;  %333 = vrot.lane.b32.xlu0 %v296_v31, %s535_s5  ;;  %v58_v30 = vsel %vm46_vm1, %v31_v20, %v32_v22  ;;  %v34_v31 = vrot.slane %v599_v7, 7 }
  0xff   :  { %v420_v59 = vsel %vm419_vm2, %v191_v32, 0.0 }
 0x100   :  { %v284_v36 = vpop.permute.xlu0 %283  ;;  %v282_v44 = vpop.permute.xlu1 %281 }
 0x101   :  { %v302_v45 = vsel %vm210_vm0, %v282_v44, %v632_v12  ;;  %v303_v46 = vsel %vm210_vm0, %v284_v36, %v641_v13  ;;  %v35_v36 = vrot.slane %v604_v8, 7  ;;  %v37_v44 = vrot.slane %v618_v10, 7 }
 0x102   :  { %188 = vperm.xlu1 %508, %v110_v33   ;;  %335 = vrot.lane.b32.xlu0 %v297_v34, %s535_s5  ;;  %v192_v33 = vmul.f32 %v746_v60, %v80_v24  ;;  %v39_v24 = vrot.slane %v632_v12, 7 }
 0x103   :  { %v53_v62 = vsel %vm46_vm1, %v36_v41, %v37_v44 }
 0x104   :  { %v288_v38 = vpop.permute.xlu0 %287  ;;  %v286_v47 = vpop.permute.xlu1 %285  ;;  %v421_v60 = vsel %vm419_vm2, %v192_v33, 0.0  ;;  %v72_v23 = vsub.f32 %v618_v10, %v53_v62  ;;  %v52_v33 = vsel %vm46_vm1, %v37_v44, %v38_v19 }
 0x105   :  { %v305_v39 = vsel %vm210_vm0, %v288_v38, %v655_v15  ;;  %v304_v48 = vsel %vm210_vm0, %v286_v47, %v646_v14  ;;  %v67_v38 = vsub.f32 %v585_v5, %v58_v30  ;;  %v40_v30 = vrot.slane %v641_v13, 7 }
 0x106   :  { %337 = vrot.lane.b32.xlu0 %v298_v37, %s535_s5  ;;  %351 = vrot.lane.b32.xlu1 %v305_v39, %s535_s5  ;;  %v82_v39 = vand.u32 2147483647, %v66_v29 }
 0x108   :  { %v290_v49 = vpop.permute.xlu1 %289 }
 0x109   :  { %v306_v50 = vsel %vm210_vm0, %v290_v49, %v660_v16 }
 0x10a   :  { %339 = vrot.lane.b32.xlu0 %v299_v40, %s535_s5  ;;  %v56_v40 = vsel %vm46_vm1, %v33_v26, %v34_v31 }
 0x10b   :  { %v69_v49 = vsub.f32 %v599_v7, %v56_v40 }
 0x10d   :  { %v85_v21 = vand.u32 2147483647, %v69_v49 }
 0x10e   :  { %341 = vrot.lane.b32.xlu0 %v300_v42, %s535_s5 }
 0x112   :  { %343 = vrot.lane.b32.xlu0 %v301_v43, %s535_s5  ;;  %v68_v43 = vsub.f32 %v590_v6, %v57_v35 }
 0x114   :  { %v84_v57 = vand.u32 2147483647, %v68_v43 }
 0x115   :  { %v129_v34 = vpop.permute.xlu0 %128 }
 0x116   :  { %345 = vrot.lane.b32.xlu0 %v302_v45, %s535_s5  ;;  %v194_v56 = vmul.f32 %v129_v34, %v82_v39 }
 0x118   :  { %v425_v25 = vsel %vm419_vm2, %v194_v56, 0.0 }
 0x119   :  { %v124_v51 = vpop.permute.xlu1 %123 }
 0x11a   :  { %347 = vrot.lane.b32.xlu0 %v303_v46, %s535_s5  ;;  %v193_v37 = vmul.f32 %v124_v51, %v81_v28  ;;  %v55_v46 = vsel %vm46_vm1, %v34_v31, %v35_v36  ;;  %v54_v51 = vsel %vm46_vm1, %v35_v36, %v36_v41  ;;  %v88_v36 = vand.u32 2147483647, %v72_v23 }
 0x11b   :  { %v70_v61 = vsub.f32 %v604_v8, %v55_v46  ;;  %v71_v22 = vsub.f32 %v613_v9, %v54_v51  ;;  %v73_v41 = vsub.f32 %v627_v11, %v52_v33 }
 0x11c   :  { %v423_v47 = vsel %vm419_vm2, %v193_v37, 0.0  ;;  %v51_v37 = vsel %vm46_vm1, %v38_v19, %v39_v24 }
 0x11d   :  { %v134_v53 = vpop.permute.xlu1 %133  ;;  %v86_v28 = vand.u32 2147483647, %v70_v61  ;;  %v87_v35 = vand.u32 2147483647, %v71_v22  ;;  %v74_v46 = vsub.f32 %v632_v12, %v51_v37 }
 0x11e   :  { %349 = vrot.lane.b32.xlu0 %v304_v48, %s535_s5  ;;  %v83_v48 = vand.u32 2147483647, %v67_v38  ;;  %v41_v38 = vrot.slane %v646_v14, 7 }
 0x11f   :  { %v90_v22 = vand.u32 2147483647, %v74_v46 }
 0x120   :  { %v195_v20 = vmul.f32 %v134_v53, %v83_v48  ;;  %v49_v49 = vsel %vm46_vm1, %v40_v30, %v41_v38 }
 0x121   :  { %v139_v58 = vpop.permute.xlu1 %138  ;;  %v76_v23 = vsub.f32 %v646_v14, %v49_v49 }
 0x122   :  { %353 = vrot.lane.b32.xlu0 %v306_v50, %s535_s5  ;;  %v422_v50 = vadd.f32 %v421_v60, %v420_v59  ;;  %v196_v26 = vmul.f32 %v139_v58, %v84_v57  ;;  %v427_v53 = vsel %vm419_vm2, %v195_v20, 0.0  ;;  %v50_v59 = vsel %vm46_vm1, %v39_v24, %v40_v30 }
 0x123   :  { %v75_v48 = vsub.f32 %v641_v13, %v50_v59  ;;  %v89_v57 = vand.u32 2147483647, %v73_v41  ;;  %v92_v33 = vand.u32 2147483647, %v76_v23 }
 0x124   :  { %v424_v4 = vadd.f32 %v423_v47, %v422_v50  ;;  %v429_v58 = vsel %vm419_vm2, %v196_v26, 0.0 }
 0x125   :  { %v144_v17 = vpop.permute.xlu1 %143  ;;  %v91_v24 = vand.u32 2147483647, %v75_v48 }
 0x126   :  { %v426_v31 = vadd.f32 %v425_v25, %v424_v4  ;;  %v197_v34 = vmul.f32 %v144_v17, %v85_v21  ;;  %v895_v21 = vand.u32 127, %v44_v52 }
 0x128   :  { %v428_v60 = vadd.f32 %v427_v53, %v426_v31  ;;  %v431_v17 = vsel %vm419_vm2, %v197_v34, 0.0  ;;  %vm209_vm3 = vcmp.gt.s32.totalorder %v895_v21, 0 }
 0x129   :  { %v149_v27 = vpop.permute.xlu1 %148 }
 0x12a   :  { %v198_v39 = vmul.f32 %v149_v27, %v86_v28  ;;  %v430_v47 = vadd.f32 %v429_v58, %v428_v60  ;;  %v42_v27 = vrot.slane %v655_v15, 7 }
 0x12c   :  { %v433_v50 = vsel %vm419_vm2, %v198_v39, 0.0  ;;  %v432_v62 = vadd.f32 %v431_v17, %v430_v47 }
 0x12d   :  { %v154_v42 = vpop.permute.xlu1 %153 }
 0x12e   :  { %v199_v44 = vmul.f32 %v154_v42, %v87_v35 }
 0x130   :  { %v435_v20 = vsel %vm419_vm2, %v199_v44, 0.0 }
 0x131   :  { %v159_v18 = vpop.permute.xlu1 %158 }
 0x132   :  { %v200_v51 = vmul.f32 %v159_v18, %v88_v36  ;;  %v434_v18 = vadd.f32 %v433_v50, %v432_v62 }
 0x134   :  { %v436_v26 = vadd.f32 %v435_v20, %v434_v18 }
 0x15c   :  { %v324_v32 = vpop.permute.xlu1 %323 }
 0x15d   :  { %v371_v42 = vsub.f32 %v557_v0, %v324_v32 }
 0x15f   :  { %v387_v28 = vand.u32 2147483647, %v371_v42 }
 0x160   :  { %v855_v45 = vpop.permute.xlu0 %325 }
 0x161   :  { %v372_v56 = vsub.f32 %v571_v2, %v855_v45  ;;  %v48_v2 = vsel %vm46_vm1, %v41_v38, %v42_v27  ;;  %v437_v45 = vsel %vm419_vm2, %v200_v51, 0.0  ;;  %v403_v38 = vsel %vm209_vm3, %v387_v28, 0.0 }
 0x162   :  { %v77_v53 = vsub.f32 %v655_v15, %v48_v2  ;;  %v438_v34 = vadd.f32 %v437_v45, %v436_v26  ;;  %v452_v46 = vsel %vm419_vm2, %v403_v38, 0.0 }
 0x163   :  { %v388_v25 = vand.u32 2147483647, %v372_v56 }
 0x164   :  { %v328_v63 = vpop.permute.xlu0 %327  ;;  %v93_v59 = vand.u32 2147483647, %v77_v53 }
 0x165   :  { %v373_v4 = vsub.f32 %v562_v1, %v328_v63 }
 0x167   :  { %v389_v30 = vand.u32 2147483647, %v373_v4 }
 0x168   :  { %v330_v29 = vpop.permute.xlu0 %329 }
 0x169   :  { %v374_v0 = vsub.f32 %v576_v3, %v330_v29  ;;  %v47_v3 = vsel %vm46_vm1, %v42_v27, %v43_v55  ;;  %v404_v29 = vsel %vm209_vm3, %v388_v25, 0.0  ;;  %v405_v58 = vsel %vm209_vm3, %v389_v30, 0.0 }
 0x16a   :  { %v78_v60 = vsub.f32 %v660_v16, %v47_v3  ;;  %v455_v47 = vsel %vm419_vm2, %v405_v58, 0.0 }
 0x16b   :  { %v390_v35 = vand.u32 2147483647, %v374_v0 }
 0x16c   :  { %v332_v40 = vpop.permute.xlu0 %331  ;;  %v94_v42 = vand.u32 2147483647, %v78_v60 }
 0x16d   :  { %v164_v43 = vpop.permute.xlu1 %163  ;;  %v375_v52 = vsub.f32 %v585_v5, %v332_v40  ;;  %v406_v48 = vsel %vm209_vm3, %v390_v35, 0.0 }
 0x16e   :  { %v201_v1 = vmul.f32 %v164_v43, %v89_v57  ;;  %v453_v43 = vsel %vm419_vm2, %v404_v29, 0.0  ;;  %v457_v4 = vsel %vm419_vm2, %v406_v48, 0.0 }
 0x16f   :  { %v391_v39 = vand.u32 2147483647, %v375_v52 }
 0x170   :  { %v334_v61 = vpop.permute.xlu0 %333  ;;  %v439_v36 = vsel %vm419_vm2, %v201_v1, 0.0 }
 0x171   :  { %v169_v19 = vpop.permute.xlu1 %168  ;;  %v376_v40 = vsub.f32 %v590_v6, %v334_v61  ;;  %v440_v17 = vadd.f32 %v439_v36, %v438_v34  ;;  %v407_v27 = vsel %vm209_vm3, %v391_v39, 0.0  ;;  %v454_v61 = vadd.f32 %v453_v43, %v452_v46 }
 0x172   :  { %v202_v32 = vmul.f32 %v169_v19, %v90_v22  ;;  %v459_v18 = vsel %vm419_vm2, %v407_v27, 0.0 }
 0x173   :  { %v392_v50 = vand.u32 2147483647, %v376_v40  ;;  %v456_v23 = vadd.f32 %v455_v47, %v454_v61 }
 0x174   :  { %v336_v63 = vpop.permute.xlu0 %335  ;;  %v441_v54 = vsel %vm419_vm2, %v202_v32, 0.0 }
 0x175   :  { %v174_v31 = vpop.permute.xlu1 %173  ;;  %v377_v44 = vsub.f32 %v599_v7, %v336_v63  ;;  %v442_v51 = vadd.f32 %v441_v54, %v440_v17  ;;  %v458_v63 = vadd.f32 %v457_v4, %v456_v23 }
 0x176   :  { %v203_v5 = vmul.f32 %v174_v31, %v91_v24 }
 0x177   :  { %v393_v19 = vand.u32 2147483647, %v377_v44  ;;  %v460_v52 = vadd.f32 %v459_v18, %v458_v63 }
 0x178   :  { %v338_v37 = vpop.permute.xlu0 %337  ;;  %v443_v6 = vsel %vm419_vm2, %v203_v5, 0.0 }
 0x179   :  { %v179_v41 = vpop.permute.xlu1 %178  ;;  %v378_v56 = vsub.f32 %v604_v8, %v338_v37  ;;  %v444_v20 = vadd.f32 %v443_v6, %v442_v51  ;;  %v408_v8 = vsel %vm209_vm3, %v392_v50, 0.0  ;;  %v409_v28 = vsel %vm209_vm3, %v393_v19, 0.0 }
 0x17a   :  { %v204_v55 = vmul.f32 %v179_v41, %v92_v33  ;;  %v461_v31 = vsel %vm419_vm2, %v408_v8, 0.0  ;;  %v463_v29 = vsel %vm419_vm2, %v409_v28, 0.0 }
 0x17b   :  { %v394_v45 = vand.u32 2147483647, %v378_v56  ;;  %v462_v35 = vadd.f32 %v461_v31, %v460_v52 }
 0x17c   :  { %v340_v49 = vpop.permute.xlu0 %339  ;;  %v445_v7 = vsel %vm419_vm2, %v204_v55, 0.0 }
 0x17d   :  { %v184_v57 = vpop.permute.xlu1 %183  ;;  %v379_v22 = vsub.f32 %v613_v9, %v340_v49  ;;  %v446_v25 = vadd.f32 %v445_v7, %v444_v20  ;;  %v410_v53 = vsel %vm209_vm3, %v394_v45, 0.0  ;;  %v464_v39 = vadd.f32 %v463_v29, %v462_v35 }
 0x17e   :  { %v205_v62 = vmul.f32 %v184_v57, %v93_v59  ;;  %v465_v37 = vsel %vm419_vm2, %v410_v53, 0.0 }
 0x17f   :  { %v395_v9 = vand.u32 2147483647, %v379_v22  ;;  %v466_v54 = vadd.f32 %v465_v37, %v464_v39 }
 0x180   :  { %v447_v24 = vsel %vm419_vm2, %v205_v62, 0.0  ;;  %v342_v2 = vpop.permute.xlu0 %341 }
 0x181   :  { %v380_v0 = vsub.f32 %v618_v10, %v342_v2  ;;  %v189_v1 = vpop.permute.xlu1 %188  ;;  %v448_v30 = vadd.f32 %v447_v24, %v446_v25  ;;  %v411_v36 = vsel %vm209_vm3, %v395_v9, 0.0 }
 0x182   :  { %v206_v26 = vmul.f32 %v189_v1, %v94_v42 }
 0x183   :  { %v396_v34 = vand.u32 2147483647, %v380_v0 }
 0x184   :  { %v449_v32 = vsel %vm419_vm2, %v206_v26, 0.0  ;;  %v344_v33 = vpop.permute.xlu0 %343 }
 0x185   :  { %v450_v3 = vadd.f32 %v449_v32, %v448_v30  ;;  %v381_v10 = vsub.f32 %v627_v11, %v344_v33  ;;  %v352_v58 = vpop.permute.xlu1 %351  ;;  %v412_v40 = vsel %vm209_vm3, %v396_v34, 0.0  ;;  %v467_v11 = vsel %vm419_vm2, %v411_v36, 0.0 }
 0x186   :  { %v385_v60 = vsub.f32 %v655_v15, %v352_v58  ;;  %v469_v43 = vsel %vm419_vm2, %v412_v40, 0.0  ;;  %v468_v44 = vadd.f32 %v467_v11, %v466_v54 }
 0x187   :  { %451 = vst.msk [vmem:[#allocation2] sm:$0xff] %vm419_vm2, %v450_v3  ;;  %v397_v5 = vand.u32 2147483647, %v381_v10 }
 0x188   :  { %v346_v38 = vpop.permute.xlu0 %345  ;;  %v470_v48 = vadd.f32 %v469_v43, %v468_v44  ;;  %v401_v49 = vand.u32 2147483647, %v385_v60 }
 0x189   :  { %v382_v41 = vsub.f32 %v632_v12, %v346_v38  ;;  %v413_v55 = vsel %vm209_vm3, %v397_v5, 0.0 }
 0x18a   :  { %v471_v12 = vsel %vm419_vm2, %v413_v55, 0.0 }
 0x18b   :  { %v398_v59 = vand.u32 2147483647, %v382_v41  ;;  %v472_v51 = vadd.f32 %v471_v12, %v470_v48 }
 0x18c   :  { %v348_v17 = vpop.permute.xlu0 %347 }
 0x18d   :  { %v414_v46 = vsel %vm209_vm3, %v398_v59, 0.0  ;;  %v383_v47 = vsub.f32 %v641_v13, %v348_v17  ;;  %v417_v13 = vsel %vm209_vm3, %v401_v49, 0.0 }
 0x18e   :  { %v473_v27 = vsel %vm419_vm2, %v414_v46, 0.0  ;;  %v479_v22 = vsel %vm419_vm2, %v417_v13, 0.0 }
 0x18f   :  { %v399_v6 = vand.u32 2147483647, %v383_v47  ;;  %v474_v61 = vadd.f32 %v473_v27, %v472_v51 }
 0x190   :  { %v350_v50 = vpop.permute.xlu0 %349 }
 0x191   :  { %v415_v15 = vsel %vm209_vm3, %v399_v6, 0.0  ;;  %v384_v56 = vsub.f32 %v646_v14, %v350_v50 }
 0x192   :  { %v475_v57 = vsel %vm419_vm2, %v415_v15, 0.0 }
 0x193   :  { %v400_v7 = vand.u32 2147483647, %v384_v56  ;;  %v476_v42 = vadd.f32 %v475_v57, %v474_v61 }
 0x194   :  { %v354_v62 = vpop.permute.xlu0 %353 }
 0x195   :  { %v416_v4 = vsel %vm209_vm3, %v400_v7, 0.0  ;;  %v386_v19 = vsub.f32 %v660_v16, %v354_v62 }
 0x196   :  { %v477_v20 = vsel %vm419_vm2, %v416_v4, 0.0 }
 0x197   :  { %v478_v23 = vadd.f32 %v477_v20, %v476_v42  ;;  %v402_v14 = vand.u32 2147483647, %v386_v19 }
 0x199   :  { %v480_v18 = vadd.f32 %v479_v22, %v478_v23  ;;  %v418_v24 = vsel %vm209_vm3, %v402_v14, 0.0 }
 0x19a   :  { %v481_v2 = vsel %vm419_vm2, %v418_v24, 0.0 }
 0x19b   :  { %v482_v8 = vadd.f32 %v481_v2, %v480_v18 }
 0x19d   :  { %484 = vst.msk [vmem:[#allocation2 + $0x8] sm:$0xff] %vm419_vm2, %v482_v8 }
 0x19e   :  { %520 = shalt.err (!%p517_p4)
}
 0x19f   :  { %s521_s22 = scalar_lea.hbm %s991_s2, 256 }
 0x1a0   :  { %p522_p5 = scmp.ne.s32.totalorder %s991_s2, %s521_s22  ;;  %p525_p6 = scmp.lt.u32.totalorder %s521_s22, %s991_s2 }
 0x1a2   :  { %p527_p7 = pnand %p525_p6, %p522_p5 }
 0x1a4   :  { %530 = shalt.err (!%p527_p7)
}
 0x1a5   :  { %s537_s27 = smov 128   ;;  %s538_s13 = smov 8  }
 0x1a6   :  { %496 = dma.vmem_to_hbm [thread:$0]  %s491_s1, 256, %s991_s2, [#allocation3], %s537_s27, %s537_s27, %s538_s13  }
 0x1a7   :  { %531 = dma.done.wait [#allocation3], 256  }
 0x1a8   :  { %532 = vsyncadd [#allocation3], 4294967040 }
 0x1a9   :  { %500 = vsyncpa [#allocation3], 1 }

</bundles_post_ra>
